<compile_context>
chip_gen: v5e
topology: v5e:2x2
jax: 0.10.0
libtpu: 0.0.40
codegen_flags: <defaults>
</compile_context>

<pallas_src>
import functools
import math

import jax
import jax.numpy as jnp
from jax.experimental import pallas as pl
from jax.experimental.pallas import tpu as pltpu


LN_EPS = 1e-6  # matches nn.LayerNorm(hidden_size, eps=1e-06)


def _cdiv(a, b):
    return -(-a // b)


def _round_up(n, m):
    return _cdiv(n, m) * m


def _make_mlp_kernel(row_chunk, n_chunks):
    """Kernel factory: LN + 5x(Linear+ReLU) over `n_chunks` row sub-chunks."""

    def kernel(x_ref, w1, b1, w2, b2, w3, b3, w4, b4, w5, b5, o_ref):
        # Weights are tiny; load once, reuse across all row chunks.
        w_vals = tuple(w[...] for w in (w1, w2, w3, w4, w5))
        b_vals = tuple(b[...] for b in (b1, b2, b3, b4, b5))

        def chunk_body(c):
            start = c * row_chunk
            if not isinstance(start, int):
                start = pl.multiple_of(start, row_chunk)
            x = x_ref[pl.ds(start, row_chunk), :].astype(jnp.float32)

            # ---- LayerNorm (two-pass statistics, affine folded into layer 1) ----
            mean = jnp.mean(x, axis=-1, keepdims=True)
            xc = x - mean
            var = jnp.mean(xc * xc, axis=-1, keepdims=True)
            h = xc * jax.lax.rsqrt(var + LN_EPS)

            # ---- Linear + ReLU chain on the MXU ----
            for w, b in zip(w_vals, b_vals):
                h = jnp.maximum(
                    jnp.dot(h, w, preferred_element_type=jnp.float32) + b, 0.0)

            o_ref[pl.ds(start, row_chunk), :] = h.astype(o_ref.dtype)

        if n_chunks == 1:
            chunk_body(0)
        else:
            pl.loop(0, n_chunks)(chunk_body)

    return kernel


# HBM-facing streams per batch row in VMEM: input block + output block, each
# lane-padded to 128 lanes of f32 (512 B/row) and double-buffered -> 2 KiB/row.
_STREAM_BYTES_PER_ROW = 2 * (128 * 4) * 2


def _vmem_budget():
    """(scoped vmem limit, byte budget for the double-buffered x/out streams)."""
    try:
        phys = int(pltpu.get_tpu_info().vmem_capacity_bytes)
    except Exception:
        phys = 64 * 1024 * 1024  # conservative (v7x-sized) fallback
    vmem_limit = min(phys * 3 // 4, 96 * 1024 * 1024)   # 96 MiB v5e/v6e, 48 MiB v7x
    # Half the scoped limit for the streamed blocks; the rest covers the
    # row-chunked intermediates (~3 MiB at row_chunk=1024), weights and slack.
    stream_budget = vmem_limit // 2
    return int(vmem_limit), int(stream_budget)


def _pick_batch_tile(B, row_chunk, stream_budget_bytes):
    tile = stream_budget_bytes // _STREAM_BYTES_PER_ROW   # ~24K rows v5e/v6e, ~12K v7x
    tile = min(tile, 32768)
    if B > 4 * row_chunk:
        # Keep >= 4 grid steps (>= 2 per v7x TensorCore) so megacore sharding
        # and cross-step DMA overlap stay effective.
        tile = min(tile, _round_up(_cdiv(B, 4), row_chunk))
    tile = min(tile, _round_up(B, 8))
    if tile >= row_chunk:
        tile = (tile // row_chunk) * row_chunk
    else:
        tile = max(8, (tile // 8) * 8)
    return int(tile)


def nn_mlp_forward(x, params, *, batch_tile=None, row_chunk=1024):
    """x: (B, hidden) float32. params: dict of layernorm / linear params."""
    B, H = x.shape
    out_dim = params["w5"].shape[0]  # torch layout (out, in) -> 2

    vmem_limit, stream_budget = _vmem_budget()
    if batch_tile is None:
        batch_tile = _pick_batch_tile(B, row_chunk, stream_budget)
    batch_tile = int(batch_tile)

    row_chunk = min(int(row_chunk), batch_tile)
    if batch_tile % row_chunk:
        row_chunk = math.gcd(batch_tile, row_chunk)
    n_chunks = batch_tile // row_chunk

    # ---- Fold LayerNorm affine (gamma, beta) into layer 1 ----
    # (xn*gamma + beta) @ W1 + b1 == xn @ (gamma[:,None]*W1) + (b1 + beta@W1)
    gamma = params["ln_gamma"].astype(jnp.float32)
    beta = params["ln_beta"].astype(jnp.float32)
    w1_io = params["w1"].T.astype(jnp.float32)                     # (H, 32)
    w1f = gamma[:, None] * w1_io
    # Elementwise + reduce (not a matmul) so the fold is done in full f32.
    b1f = params["b1"].astype(jnp.float32) + jnp.sum(beta[:, None] * w1_io, axis=0)

    ws = [w1f] + [params[f"w{i}"].T.astype(jnp.float32) for i in range(2, 6)]
    bs = [b1f.reshape(1, -1)] + [
        params[f"b{i}"].astype(jnp.float32).reshape(1, -1) for i in range(2, 6)]

    operands = []
    for w, b in zip(ws, bs):
        operands.extend([w, b])

    grid = (_cdiv(B, batch_tile),)   # no zero-pad: edge block is masked by Pallas

    def replicated(arr):
        # Full-array block, same block for every batch tile (all 2-D here).
        return pl.BlockSpec(arr.shape, lambda i: (0, 0))

    in_specs = [pl.BlockSpec((batch_tile, H), lambda i: (i, 0))]
    in_specs += [replicated(op) for op in operands]

    # Advisory cost estimate so XLA schedules neighbours around this call.
    layer_macs = H * 32 + 32 * 32 + 32 * 32 + 32 * 16 + 16 * 2
    cost = pl.CostEstimate(
        flops=int(2 * B * layer_macs + 8 * B * H),
        transcendentals=int(B),
        bytes_accessed=int(4 * (B * H + B * out_dim
                                + sum(int(w.size) for w in ws)
                                + sum(int(b.size) for b in bs))),
    )

    out = pl.pallas_call(
        _make_mlp_kernel(row_chunk, n_chunks),
        out_shape=jax.ShapeDtypeStruct((B, out_dim), jnp.float32),
        grid=grid,
        in_specs=in_specs,
        out_specs=pl.BlockSpec((batch_tile, out_dim), lambda i: (i, 0)),
        compiler_params=pltpu.CompilerParams(
            dimension_semantics=("parallel",),
            vmem_limit_bytes=vmem_limit),
        cost_estimate=cost,
    )(x, *operands)
    return out


def init_params(hidden_size, key):
    """Deterministic init mimicking PyTorch defaults, with non-trivial LN affine
    so the gamma/beta fold is actually exercised."""
    sizes = [(32, hidden_size), (32, 32), (32, 32), (16, 32), (2, 16)]
    key, kg, kb = jax.random.split(key, 3)
    params = {
        "ln_gamma": 1.0 + 0.1 * jax.random.normal(kg, (hidden_size,), jnp.float32),
        "ln_beta": 0.05 * jax.random.normal(kb, (hidden_size,), jnp.float32),
    }
    for i, (out_f, in_f) in enumerate(sizes, start=1):
        key, kw, kbi = jax.random.split(key, 3)
        bound = 1.0 / (in_f ** 0.5)
        params[f"w{i}"] = jax.random.uniform(
            kw, (out_f, in_f), jnp.float32, minval=-bound, maxval=bound)
        params[f"b{i}"] = jax.random.uniform(
            kbi, (out_f,), jnp.float32, minval=-bound, maxval=bound)
    return params


def _reference_forward(x, params):
    """Pure-JAX reference matching the PyTorch forward."""
    mean = jnp.mean(x, axis=-1, keepdims=True)
    var = jnp.mean((x - mean) ** 2, axis=-1, keepdims=True)
    h = (x - mean) / jnp.sqrt(var + LN_EPS)
    h = h * params["ln_gamma"] + params["ln_beta"]
    for i in range(1, 6):
        h = jnp.maximum(
            jnp.matmul(h, params[f"w{i}"].T,
                       precision=jax.lax.Precision.HIGHEST) + params[f"b{i}"],
            0.0)
    return h


if __name__ == "__main__":
    hidden_size = 32

    key = jax.random.PRNGKey(0)
    key, k1, k2, k3 = jax.random.split(key, 4)
    params = init_params(hidden_size, key)

    # 1) Primary small-shape run (auto batch_tile, single chunk).
    x = jax.random.normal(k1, (8, hidden_size), dtype=jnp.float32)
    out = jax.jit(nn_mlp_forward)(x, params)
    jax.block_until_ready(out)
    ref = _reference_forward(x, params)
    assert out.shape == (8, 2)
    assert jnp.allclose(out, ref, atol=1e-4, rtol=1e-4), "mismatch vs reference"

    # 2) Ragged batch with manual tile: exercises the cdiv / masked-edge path.
    x2 = jax.random.normal(k2, (13, hidden_size), dtype=jnp.float32)
    out2 = jax.jit(functools.partial(nn_mlp_forward, batch_tile=8))(x2, params)
    jax.block_until_ready(out2)
    ref2 = _reference_forward(x2, params)
    assert out2.shape == (13, 2)
    assert jnp.allclose(out2, ref2, atol=1e-4, rtol=1e-4), "ragged mismatch"

    # 3) Larger ragged batch (auto tile): exercises the in-kernel row-chunk
    #    loop (pl.loop) and a multi-step grid with a partial last block.
    x3 = jax.random.normal(k3, (2085, hidden_size), dtype=jnp.float32)
    out3 = jax.jit(nn_mlp_forward)(x3, params)
    jax.block_until_ready(out3)
    ref3 = _reference_forward(x3, params)
    assert out3.shape == (2085, 2)
    assert jnp.allclose(out3, ref3, atol=1e-4, rtol=1e-4), "large-batch mismatch"

    print("KERNEL_OK")
</pallas_src>

<mosaic_0001>
module attributes {stable_mosaic.version = 11 : i64} {
  func.func @kernel(%arg0: i32, %arg1: memref<8x32xf32, #tpu.memory_space<vmem>>, %arg2: memref<32x32xf32, #tpu.memory_space<vmem>>, %arg3: memref<1x32xf32, #tpu.memory_space<vmem>>, %arg4: memref<32x32xf32, #tpu.memory_space<vmem>>, %arg5: memref<1x32xf32, #tpu.memory_space<vmem>>, %arg6: memref<32x32xf32, #tpu.memory_space<vmem>>, %arg7: memref<1x32xf32, #tpu.memory_space<vmem>>, %arg8: memref<32x16xf32, #tpu.memory_space<vmem>>, %arg9: memref<1x16xf32, #tpu.memory_space<vmem>>, %arg10: memref<16x2xf32, #tpu.memory_space<vmem>>, %arg11: memref<1x2xf32, #tpu.memory_space<vmem>>, %arg12: memref<8x2xf32, #tpu.memory_space<vmem>>) attributes {dimension_semantics = [#tpu.dimension_semantics<parallel>], iteration_bounds = array<i64: 1>, scalar_prefetch = 0 : i64, scratch_operands = 0 : i64, tpu.core_type = #tpu.core_type<tc>, window_params = [{transform_indices = @transform_0, window_bounds = array<i64: 8, 32>}, {pipeline_mode = #tpu.pipeline_mode<synchronous>, transform_indices = @transform_1, window_bounds = array<i64: 32, 32>}, {pipeline_mode = #tpu.pipeline_mode<synchronous>, transform_indices = @transform_2, window_bounds = array<i64: 1, 32>}, {pipeline_mode = #tpu.pipeline_mode<synchronous>, transform_indices = @transform_3, window_bounds = array<i64: 32, 32>}, {pipeline_mode = #tpu.pipeline_mode<synchronous>, transform_indices = @transform_4, window_bounds = array<i64: 1, 32>}, {pipeline_mode = #tpu.pipeline_mode<synchronous>, transform_indices = @transform_5, window_bounds = array<i64: 32, 32>}, {pipeline_mode = #tpu.pipeline_mode<synchronous>, transform_indices = @transform_6, window_bounds = array<i64: 1, 32>}, {pipeline_mode = #tpu.pipeline_mode<synchronous>, transform_indices = @transform_7, window_bounds = array<i64: 32, 16>}, {pipeline_mode = #tpu.pipeline_mode<synchronous>, transform_indices = @transform_8, window_bounds = array<i64: 1, 16>}, {pipeline_mode = #tpu.pipeline_mode<synchronous>, transform_indices = @transform_9, window_bounds = array<i64: 16, 2>}, {pipeline_mode = #tpu.pipeline_mode<synchronous>, transform_indices = @transform_10, window_bounds = array<i64: 1, 2>}, {transform_indices = @transform_11, window_bounds = array<i64: 8, 2>}]} {
    %c0 = arith.constant 0 : index
    %c0_0 = arith.constant 0 : index
    %0 = vector.load %arg2[%c0, %c0_0] : memref<32x32xf32, #tpu.memory_space<vmem>>, vector<32x32xf32>
    %c0_1 = arith.constant 0 : index
    %c0_2 = arith.constant 0 : index
    %1 = vector.load %arg4[%c0_1, %c0_2] : memref<32x32xf32, #tpu.memory_space<vmem>>, vector<32x32xf32>
    %c0_3 = arith.constant 0 : index
    %c0_4 = arith.constant 0 : index
    %2 = vector.load %arg6[%c0_3, %c0_4] : memref<32x32xf32, #tpu.memory_space<vmem>>, vector<32x32xf32>
    %c0_5 = arith.constant 0 : index
    %c0_6 = arith.constant 0 : index
    %3 = vector.load %arg8[%c0_5, %c0_6] : memref<32x16xf32, #tpu.memory_space<vmem>>, vector<32x16xf32>
    %c0_7 = arith.constant 0 : index
    %c0_8 = arith.constant 0 : index
    %4 = vector.load %arg10[%c0_7, %c0_8] : memref<16x2xf32, #tpu.memory_space<vmem>>, vector<16x2xf32>
    %c0_9 = arith.constant 0 : index
    %c0_10 = arith.constant 0 : index
    %5 = vector.load %arg3[%c0_9, %c0_10] : memref<1x32xf32, #tpu.memory_space<vmem>>, vector<1x32xf32>
    %c0_11 = arith.constant 0 : index
    %c0_12 = arith.constant 0 : index
    %6 = vector.load %arg5[%c0_11, %c0_12] : memref<1x32xf32, #tpu.memory_space<vmem>>, vector<1x32xf32>
    %c0_13 = arith.constant 0 : index
    %c0_14 = arith.constant 0 : index
    %7 = vector.load %arg7[%c0_13, %c0_14] : memref<1x32xf32, #tpu.memory_space<vmem>>, vector<1x32xf32>
    %c0_15 = arith.constant 0 : index
    %c0_16 = arith.constant 0 : index
    %8 = vector.load %arg9[%c0_15, %c0_16] : memref<1x16xf32, #tpu.memory_space<vmem>>, vector<1x16xf32>
    %c0_17 = arith.constant 0 : index
    %c0_18 = arith.constant 0 : index
    %9 = vector.load %arg11[%c0_17, %c0_18] : memref<1x2xf32, #tpu.memory_space<vmem>>, vector<1x2xf32>
    %c0_19 = arith.constant 0 : index
    %c0_20 = arith.constant 0 : index
    %10 = vector.load %arg1[%c0_19, %c0_20] : memref<8x32xf32, #tpu.memory_space<vmem>>, vector<8x32xf32>
    %cst = arith.constant dense<0.000000e+00> : vector<8xf32>
    %11 = vector.multi_reduction <add>, %10, %cst [1] : vector<8x32xf32> to vector<8xf32>
    %12 = vector.shape_cast %11 : vector<8xf32> to vector<8x1xf32>
    %cst_21 = arith.constant 3.200000e+01 : f32
    %13 = vector.broadcast %cst_21 : f32 to vector<8x1xf32>
    %14 = arith.divf %12, %13 : vector<8x1xf32>
    %15 = vector.broadcast %14 : vector<8x1xf32> to vector<8x32xf32>
    %16 = arith.subf %10, %15 : vector<8x32xf32>
    %17 = arith.mulf %16, %16 : vector<8x32xf32>
    %cst_22 = arith.constant dense<0.000000e+00> : vector<8xf32>
    %18 = vector.multi_reduction <add>, %17, %cst_22 [1] : vector<8x32xf32> to vector<8xf32>
    %19 = vector.shape_cast %18 : vector<8xf32> to vector<8x1xf32>
    %cst_23 = arith.constant 3.200000e+01 : f32
    %20 = vector.broadcast %cst_23 : f32 to vector<8x1xf32>
    %21 = arith.divf %19, %20 : vector<8x1xf32>
    %cst_24 = arith.constant 9.99999997E-7 : f32
    %22 = vector.broadcast %cst_24 : f32 to vector<8x1xf32>
    %23 = arith.addf %21, %22 : vector<8x1xf32>
    %24 = math.rsqrt %23 : vector<8x1xf32>
    %25 = vector.broadcast %24 : vector<8x1xf32> to vector<8x32xf32>
    %26 = arith.mulf %16, %25 : vector<8x32xf32>
    %cst_25 = arith.constant dense<0.000000e+00> : vector<8x32xf32>
    %27 = tpu.matmul %26, %0, %cst_25 {dimension_numbers = #tpu.dot_dimension_numbers<[1], [0], [0], [1], [0, 0, 1, 1], [], []>} : vector<8x32xf32>, vector<32x32xf32>, vector<8x32xf32> -> vector<8x32xf32>
    %28 = vector.broadcast %5 : vector<1x32xf32> to vector<8x32xf32>
    %29 = arith.addf %27, %28 : vector<8x32xf32>
    %cst_26 = arith.constant 0.000000e+00 : f32
    %30 = vector.broadcast %cst_26 : f32 to vector<8x32xf32>
    %31 = arith.maximumf %29, %30 : vector<8x32xf32>
    %cst_27 = arith.constant dense<0.000000e+00> : vector<8x32xf32>
    %32 = tpu.matmul %31, %1, %cst_27 {dimension_numbers = #tpu.dot_dimension_numbers<[1], [0], [0], [1], [0, 0, 1, 1], [], []>} : vector<8x32xf32>, vector<32x32xf32>, vector<8x32xf32> -> vector<8x32xf32>
    %33 = vector.broadcast %6 : vector<1x32xf32> to vector<8x32xf32>
    %34 = arith.addf %32, %33 : vector<8x32xf32>
    %cst_28 = arith.constant 0.000000e+00 : f32
    %35 = vector.broadcast %cst_28 : f32 to vector<8x32xf32>
    %36 = arith.maximumf %34, %35 : vector<8x32xf32>
    %cst_29 = arith.constant dense<0.000000e+00> : vector<8x32xf32>
    %37 = tpu.matmul %36, %2, %cst_29 {dimension_numbers = #tpu.dot_dimension_numbers<[1], [0], [0], [1], [0, 0, 1, 1], [], []>} : vector<8x32xf32>, vector<32x32xf32>, vector<8x32xf32> -> vector<8x32xf32>
    %38 = vector.broadcast %7 : vector<1x32xf32> to vector<8x32xf32>
    %39 = arith.addf %37, %38 : vector<8x32xf32>
    %cst_30 = arith.constant 0.000000e+00 : f32
    %40 = vector.broadcast %cst_30 : f32 to vector<8x32xf32>
    %41 = arith.maximumf %39, %40 : vector<8x32xf32>
    %cst_31 = arith.constant dense<0.000000e+00> : vector<8x16xf32>
    %42 = tpu.matmul %41, %3, %cst_31 {dimension_numbers = #tpu.dot_dimension_numbers<[1], [0], [0], [1], [0, 0, 1, 1], [], []>} : vector<8x32xf32>, vector<32x16xf32>, vector<8x16xf32> -> vector<8x16xf32>
    %43 = vector.broadcast %8 : vector<1x16xf32> to vector<8x16xf32>
    %44 = arith.addf %42, %43 : vector<8x16xf32>
    %cst_32 = arith.constant 0.000000e+00 : f32
    %45 = vector.broadcast %cst_32 : f32 to vector<8x16xf32>
    %46 = arith.maximumf %44, %45 : vector<8x16xf32>
    %cst_33 = arith.constant dense<0.000000e+00> : vector<8x2xf32>
    %47 = tpu.matmul %46, %4, %cst_33 {dimension_numbers = #tpu.dot_dimension_numbers<[1], [0], [0], [1], [0, 0, 1, 1], [], []>} : vector<8x16xf32>, vector<16x2xf32>, vector<8x2xf32> -> vector<8x2xf32>
    %48 = vector.broadcast %9 : vector<1x2xf32> to vector<8x2xf32>
    %49 = arith.addf %47, %48 : vector<8x2xf32>
    %cst_34 = arith.constant 0.000000e+00 : f32
    %50 = vector.broadcast %cst_34 : f32 to vector<8x2xf32>
    %51 = arith.maximumf %49, %50 : vector<8x2xf32>
    %c0_35 = arith.constant 0 : index
    %c0_36 = arith.constant 0 : index
    %52 = vector.load %arg12[%c0_35, %c0_36] : memref<8x2xf32, #tpu.memory_space<vmem>>, vector<8x2xf32>
    tpu.vector_store %arg12[%c0_35, %c0_36], %51 {strides = array<i32>} : memref<8x2xf32, #tpu.memory_space<vmem>>, vector<8x2xf32>,
    return
  }
  func.func @transform_0(%arg0: i32) -> (i32, i32) {
    %c0_i32 = arith.constant 0 : i32
    %c0_i32_0 = arith.constant 0 : i32
    return %arg0, %c0_i32 : i32, i32
  }
  func.func @transform_1(%arg0: i32) -> (i32, i32) {
    %c0_i32 = arith.constant 0 : i32
    %c0_i32_0 = arith.constant 0 : i32
    %c0_i32_1 = arith.constant 0 : i32
    return %c0_i32, %c0_i32_0 : i32, i32
  }
  func.func @transform_2(%arg0: i32) -> (i32, i32) {
    %c0_i32 = arith.constant 0 : i32
    %c0_i32_0 = arith.constant 0 : i32
    %c0_i32_1 = arith.constant 0 : i32
    return %c0_i32, %c0_i32_0 : i32, i32
  }
  func.func @transform_3(%arg0: i32) -> (i32, i32) {
    %c0_i32 = arith.constant 0 : i32
    %c0_i32_0 = arith.constant 0 : i32
    %c0_i32_1 = arith.constant 0 : i32
    return %c0_i32, %c0_i32_0 : i32, i32
  }
  func.func @transform_4(%arg0: i32) -> (i32, i32) {
    %c0_i32 = arith.constant 0 : i32
    %c0_i32_0 = arith.constant 0 : i32
    %c0_i32_1 = arith.constant 0 : i32
    return %c0_i32, %c0_i32_0 : i32, i32
  }
  func.func @transform_5(%arg0: i32) -> (i32, i32) {
    %c0_i32 = arith.constant 0 : i32
    %c0_i32_0 = arith.constant 0 : i32
    %c0_i32_1 = arith.constant 0 : i32
    return %c0_i32, %c0_i32_0 : i32, i32
  }
  func.func @transform_6(%arg0: i32) -> (i32, i32) {
    %c0_i32 = arith.constant 0 : i32
    %c0_i32_0 = arith.constant 0 : i32
    %c0_i32_1 = arith.constant 0 : i32
    return %c0_i32, %c0_i32_0 : i32, i32
  }
  func.func @transform_7(%arg0: i32) -> (i32, i32) {
    %c0_i32 = arith.constant 0 : i32
    %c0_i32_0 = arith.constant 0 : i32
    %c0_i32_1 = arith.constant 0 : i32
    return %c0_i32, %c0_i32_0 : i32, i32
  }
  func.func @transform_8(%arg0: i32) -> (i32, i32) {
    %c0_i32 = arith.constant 0 : i32
    %c0_i32_0 = arith.constant 0 : i32
    %c0_i32_1 = arith.constant 0 : i32
    return %c0_i32, %c0_i32_0 : i32, i32
  }
  func.func @transform_9(%arg0: i32) -> (i32, i32) {
    %c0_i32 = arith.constant 0 : i32
    %c0_i32_0 = arith.constant 0 : i32
    %c0_i32_1 = arith.constant 0 : i32
    return %c0_i32, %c0_i32_0 : i32, i32
  }
  func.func @transform_10(%arg0: i32) -> (i32, i32) {
    %c0_i32 = arith.constant 0 : i32
    %c0_i32_0 = arith.constant 0 : i32
    %c0_i32_1 = arith.constant 0 : i32
    return %c0_i32, %c0_i32_0 : i32, i32
  }
  func.func @transform_11(%arg0: i32) -> (i32, i32) {
    %c0_i32 = arith.constant 0 : i32
    %c0_i32_0 = arith.constant 0 : i32
    return %arg0, %c0_i32 : i32, i32
  }
}

</mosaic_0001>

<bundles_post_ra>
// kernel: nn_mlp_forward.1
= control target key start
LH: loop header
LB: loop body
LE: loop exit
PB: predicated region body
PF: predicated region fallthrough
CT: control target
= control target key end

     0   :  { %vm62_vm0 = vcmask 261120   ;;  %v249_v2 = vmov 32.0   ;;  %vm203_vm5 = vcmask 130048   ;;  %vm228_vm6 = vcmask 15360   ;;  %s391_s0 = inlined_call_operand.vmem [shape: f32[8,32], index: 0, kind: input, shape index: {}]   ;;  %s392_s2 = inlined_call_operand.vmem [shape: f32[1,32], index: 2, kind: input, shape index: {}]   ;;  %s393_s1 = inlined_call_operand.vmem [shape: f32[32,32], index: 1, kind: input, shape index: {}]   ;;  %s394_s3 = inlined_call_operand.vmem [shape: f32[32,32], index: 3, kind: input, shape index: {}]   ;;  %s395_s4 = inlined_call_operand.vmem [shape: f32[1,32], index: 4, kind: input, shape index: {}]   ;;  %s396_s5 = inlined_call_operand.vmem [shape: f32[32,32], index: 5, kind: input, shape index: {}]   ;;  %s397_s6 = inlined_call_operand.vmem [shape: f32[1,32], index: 6, kind: input, shape index: {}]   ;;  %s398_s7 = inlined_call_operand.vmem [shape: f32[32,16], index: 7, kind: input, shape index: {}]   ;;  %s399_s8 = inlined_call_operand.vmem [shape: f32[1,16], index: 8, kind: input, shape index: {}]   ;;  %s400_s9 = inlined_call_operand.vmem [shape: f32[16,2], index: 9, kind: input, shape index: {}]   ;;  %s401_s10 = inlined_call_operand.vmem [shape: f32[1,2], index: 10, kind: input, shape index: {}]   ;;  %s402_s11 = inlined_call_operand.vmem [shape: f32[8,2], index: 11, kind: output, shape index: {}]  }
   0x1   :  { %v61_v0 = vld [vmem:[%s391_s0] sm:$0xff]  ;;  %245 = vrcp.f32 %v249_v2  ;;  %v41_v14 = vld [vmem:[%s393_s1 + $0x18] sm:$0xff]  ;;  %v40_v15 = vld [vmem:[%s393_s1 + $0x10] sm:$0xff] }
   0x2   :  { %v63_v1 = vsel %vm62_vm0, %v61_v0, 0.0  ;;  %110 = vmatpush.msra.mxu0 %v41_v14  ;;  %v39_v16 = vld [vmem:[%s393_s1 + $0x8] sm:$0xff]  ;;  %v38_v17 = vld [vmem:[%s393_s1] sm:$0xff]  ;;  %v45_v18 = vld [vmem:[%s394_s3 + $0x18] sm:$0xff] }
   0x3   :  { %64 = vadd.xlane.f32.xlu0 %v63_v1  ;;  %137 = vmatpush.msra.mxu1 %v45_v18  ;;  %v44_v30 = vld [vmem:[%s394_s3 + $0x10] sm:$0xff]  ;;  %v43_v31 = vld [vmem:[%s394_s3 + $0x8] sm:$0xff]  ;;  %v42_v32 = vld [vmem:[%s394_s3] sm:$0xff] }
   0x4   :  { %111 = vmatpush.msra.mxu0 %v40_v15  ;;  %v49_v33 = vld [vmem:[%s396_s5 + $0x18] sm:$0xff]  ;;  %v240_v34 = vld [vmem:[%s392_s2] ss:$0 sm:$0xff]  ;;  %v48_v38 = vld [vmem:[%s396_s5 + $0x10] sm:$0xff] }
   0x5   :  { %138 = vmatpush.msra.mxu1 %v44_v30  ;;  %164 = vmatpush.msra.mxu2 %v49_v33  ;;  %v47_v39 = vld [vmem:[%s396_s5 + $0x8] sm:$0xff]  ;;  %v46_v40 = vld [vmem:[%s396_s5] sm:$0xff]  ;;  %v53_v41 = vld [vmem:[%s398_s7 + $0x18] sm:$0xff] }
   0x6   :  { %112 = vmatpush.msra.mxu0 %v39_v16  ;;  %191 = vmatpush.msra.mxu3 %v53_v41  ;;  %v241_v42 = vld [vmem:[%s395_s4] ss:$0 sm:$0xff]  ;;  %v52_v46 = vld [vmem:[%s398_s7 + $0x10] sm:$0xff]  ;;  %v51_v47 = vld [vmem:[%s398_s7 + $0x8] sm:$0xff] }
   0x7   :  { %v246_v3 = vpop.eup %245  ;;  %139 = vmatpush.msra.mxu1 %v43_v31  ;;  %165 = vmatpush.msra.mxu2 %v48_v38  ;;  %v50_v48 = vld [vmem:[%s398_s7] sm:$0xff]  ;;  %v55_v49 = vld [vmem:[%s400_s9 + $0x8] sm:$0xff] }
   0x8   :  { %v67_v4 = vmul.f32 32.0, %v246_v3  ;;  %vm71_vm1 = vweird.f32 %v246_v3  ;;  %113 = vmatpush.msra.mxu0 %v38_v17  ;;  %192 = vmatpush.msra.mxu3 %v52_v46  ;;  %v242_v50 = vld [vmem:[%s397_s6] ss:$0 sm:$0xff] }
   0x9   :  { %140 = vmatpush.msra.mxu1 %v42_v32  ;;  %166 = vmatpush.msra.mxu2 %v47_v39  ;;  %v54_v54 = vld [vmem:[%s400_s9] sm:$0xff] }
   0xa   :  { %v68_v5 = vsub.f32 1.0, %v67_v4  ;;  %193 = vmatpush.msra.mxu3 %v51_v47  ;;  %221 = vmatpush.msrb.mxu0 %v55_v49  ;;  %v243_v55 = vld [vmem:[%s399_s8] ss:$0 sm:$0xff] }
   0xb   :  { %167 = vmatpush.msra.mxu2 %v46_v40  ;;  %v244_v59 = vld [vmem:[%s401_s10] ss:$0 sm:$0xff] }
   0xc   :  { %v69_v6 = vmul.f32 %v246_v3, %v68_v5  ;;  %194 = vmatpush.msra.mxu3 %v50_v48  ;;  %222 = vmatpush.msrb.mxu0 %v54_v54 }
   0xe   :  { %v70_v7 = vadd.f32 %v246_v3, %v69_v6 }
  0x10   :  { %v72_v8 = vsel %vm71_vm1, %v246_v3, %v70_v7 }
  0x76   :  { %v65_v9 = vpop.xlane.xlu0 %64 }
  0x77   :  { %v73_v10 = vmul.f32 %v72_v8, %v65_v9 }
  0x79   :  { %v74_v11 = vsub.f32 %v61_v0, %v73_v10 }
  0x7b   :  { %v75_v12 = vmul.f32 %v74_v11, %v74_v11 }
  0x7d   :  { %v76_v13 = vsel %vm62_vm0, %v75_v12, 0.0 }
  0x7e   :  { %77 = vadd.xlane.f32.xlu0 %v76_v13 }
  0xf1   :  { %v78_v19 = vpop.xlane.xlu0 %77 }
  0xf2   :  { %v79_v20 = vmul.f32 %v78_v19, %v72_v8 }
  0xf4   :  { %v80_v21 = vadd.f32 1e-06, %v79_v20 }
  0xf6   :  { %247 = vrsqrt.f32 %v80_v21  ;;  %vm87_vm3 = vweird.f32 %v80_v21 }
  0xfc   :  { %v248_v22 = vpop.eup %247 }
  0xfd   :  { %v82_v23 = vmul.f32 %v248_v22, %v80_v21  ;;  %vm88_vm2 = vweird.f32 %v248_v22 }
  0xfe   :  { %vm89_vm4 = vmor %vm87_vm3, %vm88_vm2 }
  0xff   :  { %v83_v24 = vmul.f32 %v248_v22, %v82_v23 }
 0x101   :  { %v84_v25 = vmul.f32 0.5, %v83_v24 }
 0x103   :  { %v85_v26 = vsub.f32 1.5, %v84_v25 }
 0x105   :  { %v86_v27 = vmul.f32 %v248_v22, %v85_v26 }
 0x107   :  { %v90_v28 = vsel %vm89_vm4, %v248_v22, %v86_v27 }
 0x108   :  { %v91_v29 = vmul.f32 %v90_v28, %v74_v11 }
 0x10a   :  { %234 = vmatmul.msk.f32.vlgmr.msra.gmra.mxu0 %vm62_vm0, %v91_v29 }
 0x187   :  { %v115_v35 = vpop.f32.mrf.mxu0 }
 0x188   :  { %v116_v36 = vadd.f32 %v240_v34, %v115_v35 }
 0x18a   :  { %v118_v37 = vmax.f32 %v116_v36, 0.0 }
 0x18c   :  { %235 = vmatmul.msk.f32.vlgmr.msra.gmra.mxu1 %vm62_vm0, %v118_v37 }
 0x209   :  { %v142_v43 = vpop.f32.mrf.mxu1 }
 0x20a   :  { %v143_v44 = vadd.f32 %v241_v42, %v142_v43 }
 0x20c   :  { %v145_v45 = vmax.f32 %v143_v44, 0.0 }
 0x20e   :  { %236 = vmatmul.msk.f32.vlgmr.msra.gmra.mxu2 %vm62_vm0, %v145_v45 }
 0x291   :  { %v169_v51 = vpop.f32.mrf.mxu2 }
 0x292   :  { %v170_v52 = vadd.f32 %v242_v50, %v169_v51 }
 0x294   :  { %v172_v53 = vmax.f32 %v170_v52, 0.0 }
 0x296   :  { %237 = vmatmul.msk.f32.vlgmr.msra.gmra.mxu3 %vm62_vm0, %v172_v53 }
 0x319   :  { %v196_v56 = vpop.f32.mrf.mxu3 }
 0x31a   :  { %v197_v57 = vadd.f32 %v243_v55, %v196_v56 }
 0x31c   :  { %v199_v58 = vmax.f32 %v197_v57, 0.0 }
 0x31e   :  { %238 = vmatmul.msk.f32.vlgmr.msrb.gmra.mxu0 %vm203_vm5, %v199_v58 }
 0x39b   :  { %v224_v60 = vpop.f32.mrf.mxu0 }
 0x39c   :  { %v225_v61 = vadd.f32 %v244_v59, %v224_v60 }
 0x39e   :  { %v227_v62 = vmax.f32 %v225_v61, 0.0 }
 0x3a0   :  { %229 = vst.msk [vmem:[%s402_s11] sm:$0xff] %vm228_vm6, %v227_v62 }

</bundles_post_ra>
